<compile_context>
chip_gen: v7x
topology: tpu7x:2x2x1
jax: 0.10.0
libtpu: 0.0.40
codegen_flags: <defaults>
</compile_context>

<pallas_src>
import jax
import jax.numpy as jnp
from jax.experimental import pallas as pl
from jax.experimental.pallas import tpu as pltpu

LANE = 128


def mlp_l2_kernel(x_ref, w1_ref, b1_ref, w2_ref, b2_ref, o_ref):
    # Linear 1 on the MXU (f32 accumulation), f32 bias + ReLU epilogue on the VPU.
    h = jnp.dot(x_ref[...], w1_ref[...], preferred_element_type=jnp.float32)
    h = jnp.maximum(h + b1_ref[...], 0.0)
    # Linear 2: cast the ReLU output to the weight dtype for the MXU, accumulate
    # in f32, add bias in f32, store in the output dtype.
    y = jnp.dot(h.astype(w2_ref.dtype), w2_ref[...],
                preferred_element_type=jnp.float32)
    o_ref[...] = (y + b2_ref[...]).astype(o_ref.dtype)


def _round_up(n, m):
    return ((n + m - 1) // m) * m


def _pad_axis(a, axis, multiple):
    pad = (-a.shape[axis]) % multiple
    if pad == 0:
        return a
    widths = [(0, 0)] * a.ndim
    widths[axis] = (0, pad)
    return jnp.pad(a, widths)


def _tpu_info():
    """(vmem_capacity_bytes, tensorcores_per_chip) with safe fallbacks."""
    vmem_cap = 64 * 1024 * 1024  # conservative default (v7x per-TC VMEM)
    n_cores = 1
    try:
        info = pltpu.get_tpu_info()
        vmem_cap = int(getattr(info, "vmem_capacity_bytes", vmem_cap))
    except Exception:
        pass
    try:
        kind = jax.devices()[0].device_kind.lower()
        if "7" in kind:          # v7x has 2 TensorCores per chip
            n_cores = 2
    except Exception:
        pass
    if vmem_cap <= 64 * 1024 * 1024:
        n_cores = max(n_cores, 2)  # 64 MiB/TC also implies v7x
    return vmem_cap, n_cores


def make_mlp_l2(w1, b1, w2, b2, *, compute_dtype=jnp.bfloat16, out_dtype=None,
                tile_b=None):
    """Build a jitted forward(x) computing relu(x @ w1 + b1) @ w2 + b2.

    Layout: w1 [Cin, Ch], b1 [Ch] or [1, Ch], w2 [Ch, Cout], b2 [Cout] or [1, Cout]
    (weights transposed vs. PyTorch's [out, in], so the kernel does x @ W on the MXU).

    compute_dtype is an explicit choice of the MXU *input* dtype.  bfloat16
    (default, native MXU dtype) quantizes matmul inputs to bf16 with f32
    accumulation; float32 matches an f32 PyTorch MLP exactly but is 3-6x slower
    on the MXU.  Bias add + ReLU always run in f32.
    """
    Cin, Ch = w1.shape
    assert w2.shape[0] == Ch
    Cout = w2.shape[1]

    compute_dtype = jnp.dtype(compute_dtype)
    c_item = compute_dtype.itemsize

    # ---- init-time (hoisted) weight/bias pad + cast: done exactly once. ----
    w1p = _pad_axis(_pad_axis(jnp.asarray(w1), 0, LANE), 1, LANE).astype(compute_dtype)
    w2p = _pad_axis(_pad_axis(jnp.asarray(w2), 0, LANE), 1, LANE).astype(compute_dtype)
    b1p = _pad_axis(jnp.asarray(b1).reshape(1, Ch).astype(jnp.float32), 1, LANE)
    b2p = _pad_axis(jnp.asarray(b2).reshape(1, Cout).astype(jnp.float32), 1, LANE)
    Cin_p, Ch_p = w1p.shape
    Cout_p = w2p.shape[1]

    vmem_cap, n_cores = _tpu_info()
    sub = 16 if compute_dtype == jnp.dtype(jnp.bfloat16) else 8

    resident_bytes = (Cin_p * Ch_p + Ch_p * Cout_p) * c_item + (Ch_p + Cout_p) * 4
    # Static pipeline-mode choice: single-buffer the resident weights only when
    # they are a meaningful fraction of VMEM (saves nothing at small sizes).
    single_buffer_weights = (2 * resident_bytes) > (vmem_cap // 8)
    weight_pipeline_mode = pl.Buffered(1) if single_buffer_weights else None

    def _const_spec(shape):
        if weight_pipeline_mode is None:
            return pl.BlockSpec(shape, lambda i: (0, 0))
        return pl.BlockSpec(shape, lambda i: (0, 0),
                            pipeline_mode=weight_pipeline_mode)

    def _pick_tile_b(B):
        if tile_b is not None:
            t = tile_b
        elif n_cores >= 2:
            # v7x: keep >= 2 parallel batch tiles so both TensorCores get work.
            t = min(512, _round_up(pl.cdiv(_round_up(B, sub), n_cores), sub))
        else:
            # v5e/v6e: single TensorCore -> one full-batch tile (grid=(1,)),
            # capped so the streamed x/out tiles stay well inside VMEM.
            t = min(1024, _round_up(B, sub))
        return max(sub, (t // sub) * sub)

    def _build_call(Bp, tb, odtype):
        o_item = jnp.dtype(odtype).itemsize
        grid = (Bp // tb,)

        flops = 2 * Bp * (Cin_p * Ch_p + Ch_p * Cout_p)
        bytes_accessed = (Bp * Cin_p * c_item
                          + (Cin_p * Ch_p + Ch_p * Cout_p) * c_item
                          + (Ch_p + Cout_p) * 4
                          + Bp * Cout_p * o_item)
        cost = pl.CostEstimate(flops=flops, transcendentals=0,
                               bytes_accessed=bytes_accessed)

        # VMEM budget: resident weights/biases (x1 or x2 buffers), streamed
        # x/out tiles (double-buffered), f32 intermediates; 2x headroom,
        # capped generation-aware at ~80% of per-core capacity (no 32 MiB floor).
        weight_bufs = 1 if single_buffer_weights else 2
        stream_bytes = 2 * tb * (Cin_p * c_item + Cout_p * o_item)
        scratch_bytes = tb * (Ch_p + Cout_p) * 4
        needed = weight_bufs * resident_bytes + stream_bytes + scratch_bytes
        vmem_limit = int(min(0.8 * vmem_cap, max(8 * 1024 * 1024, 2 * needed)))

        return pl.pallas_call(
            mlp_l2_kernel,
            out_shape=jax.ShapeDtypeStruct((Bp, Cout_p), odtype),
            grid_spec=pltpu.PrefetchScalarGridSpec(
                num_scalar_prefetch=0,
                grid=grid,
                in_specs=[
                    pl.BlockSpec((tb, Cin_p), lambda i: (i, 0)),  # x batch tile
                    _const_spec((Cin_p, Ch_p)),                   # W1 (resident)
                    _const_spec((1, Ch_p)),                       # b1 (f32)
                    _const_spec((Ch_p, Cout_p)),                  # W2 (resident)
                    _const_spec((1, Cout_p)),                     # b2 (f32)
                ],
                out_specs=pl.BlockSpec((tb, Cout_p), lambda i: (i, 0)),
            ),
            compiler_params=pltpu.CompilerParams(
                dimension_semantics=("parallel",),
                vmem_limit_bytes=vmem_limit,
            ),
            cost_estimate=cost,
        )

    @jax.jit
    def forward(x):
        B, Cin_in = x.shape
        assert Cin_in == Cin, "input feature dim mismatch"
        odtype = out_dtype if out_dtype is not None else x.dtype
        tb = _pick_tile_b(B)
        Bp = _round_up(B, tb)
        # Pad + cast fuse into the same XLA program as the kernel call.
        xp = _pad_axis(_pad_axis(x, 1, LANE), 0, tb).astype(compute_dtype)
        out_p = _build_call(Bp, tb, odtype)(xp, w1p, b1p, w2p, b2p)
        return out_p[:B, :Cout]

    return forward


def init_params(key, in_channels, hidden_channels, out_channels, dtype=jnp.float32):
    # Deterministic init mimicking PyTorch nn.Linear default (uniform +-1/sqrt(fan_in)),
    # stored as [in, out] (transpose of PyTorch's [out, in]) so the kernel does x @ W.
    k1, k2, k3, k4 = jax.random.split(key, 4)
    lim1 = 1.0 / (in_channels ** 0.5)
    lim2 = 1.0 / (hidden_channels ** 0.5)
    w1 = jax.random.uniform(k1, (in_channels, hidden_channels), dtype, -lim1, lim1)
    b1 = jax.random.uniform(k2, (1, hidden_channels), dtype, -lim1, lim1)
    w2 = jax.random.uniform(k3, (hidden_channels, out_channels), dtype, -lim2, lim2)
    b2 = jax.random.uniform(k4, (1, out_channels), dtype, -lim2, lim2)
    return w1, b1, w2, b2


def _ref_forward(x, w1, b1, w2, b2, compute_dtype):
    # Plain-JAX reference with the same quantization points as the kernel.
    f32 = jnp.float32
    xc = x.astype(compute_dtype).astype(f32)
    w1c = w1.astype(compute_dtype).astype(f32)
    w2c = w2.astype(compute_dtype).astype(f32)
    h = jnp.maximum(xc @ w1c + b1.astype(f32), 0.0)
    h = h.astype(compute_dtype).astype(f32)
    return (h @ w2c + b2.astype(f32)).astype(x.dtype)


if __name__ == "__main__":
    in_channels, hidden_channels, out_channels = 32, 64, 16
    batch = 256  # 2 x 128-row tiles on v7x (both TCs busy); 1 x 256-row tile on v5e/v6e

    key = jax.random.PRNGKey(0)
    kx, kp = jax.random.split(key)
    x = jax.random.normal(kx, (batch, in_channels), jnp.float32)
    w1, b1, w2, b2 = init_params(kp, in_channels, hidden_channels, out_channels)

    # Plain f32 reference for the PyTorch module semantics.
    ref_f32 = jnp.maximum(x @ w1 + b1, 0.0) @ w2 + b2

    # Explicit bf16 MXU-input choice (native MXU dtype; f32 accumulation + f32
    # bias/ReLU epilogue).  Weight padding/casting happens once, here.
    forward = make_mlp_l2(w1, b1, w2, b2, compute_dtype=jnp.bfloat16)

    out = jax.block_until_ready(forward(x))
    assert out.shape == (batch, out_channels)
    assert out.dtype == x.dtype

    # Tight check vs. a reference with identical bf16 quantization points, and a
    # loose check vs. the pure-f32 reference.
    ref_bf16 = _ref_forward(x, w1, b1, w2, b2, jnp.bfloat16)
    assert jnp.allclose(out, ref_bf16, atol=2e-3, rtol=2e-3)
    assert jnp.allclose(out, ref_f32, atol=1e-1, rtol=1e-1)

    # Second call hits the cached jit executable (no re-pad, no re-compile).
    out2 = jax.block_until_ready(forward(x))
    assert jnp.allclose(out, out2)

    print("KERNEL_OK")
</pallas_src>

<mosaic_0001>
module attributes {stable_mosaic.version = 11 : i64} {
  func.func @mlp_l2_kernel(%arg0: i32, %arg1: memref<128x128xbf16, #tpu.memory_space<vmem>>, %arg2: memref<128x128xbf16, #tpu.memory_space<vmem>>, %arg3: memref<1x128xf32, #tpu.memory_space<vmem>>, %arg4: memref<128x128xbf16, #tpu.memory_space<vmem>>, %arg5: memref<1x128xf32, #tpu.memory_space<vmem>>, %arg6: memref<128x128xf32, #tpu.memory_space<vmem>>) attributes {dimension_semantics = [#tpu.dimension_semantics<parallel>], iteration_bounds = array<i64: 2>, scalar_prefetch = 0 : i64, scratch_operands = 0 : i64, tpu.core_type = #tpu.core_type<tc>, window_params = [{transform_indices = @transform_0, window_bounds = array<i64: 128, 128>}, {pipeline_mode = #tpu.pipeline_mode<synchronous>, transform_indices = @transform_1, window_bounds = array<i64: 128, 128>}, {pipeline_mode = #tpu.pipeline_mode<synchronous>, transform_indices = @transform_2, window_bounds = array<i64: 1, 128>}, {pipeline_mode = #tpu.pipeline_mode<synchronous>, transform_indices = @transform_3, window_bounds = array<i64: 128, 128>}, {pipeline_mode = #tpu.pipeline_mode<synchronous>, transform_indices = @transform_4, window_bounds = array<i64: 1, 128>}, {transform_indices = @transform_5, window_bounds = array<i64: 128, 128>}]} {
    %c0 = arith.constant 0 : index
    %c0_0 = arith.constant 0 : index
    %0 = vector.load %arg1[%c0, %c0_0] : memref<128x128xbf16, #tpu.memory_space<vmem>>, vector<128x128xbf16>
    %c0_1 = arith.constant 0 : index
    %c0_2 = arith.constant 0 : index
    %1 = vector.load %arg2[%c0_1, %c0_2] : memref<128x128xbf16, #tpu.memory_space<vmem>>, vector<128x128xbf16>
    %cst = arith.constant dense<0.000000e+00> : vector<128x128xf32>
    %2 = tpu.matmul %0, %1, %cst {dimension_numbers = #tpu.dot_dimension_numbers<[1], [0], [0], [1], [0, 0, 1, 1], [], []>} : vector<128x128xbf16>, vector<128x128xbf16>, vector<128x128xf32> -> vector<128x128xf32>
    %c0_3 = arith.constant 0 : index
    %c0_4 = arith.constant 0 : index
    %3 = vector.load %arg3[%c0_3, %c0_4] : memref<1x128xf32, #tpu.memory_space<vmem>>, vector<1x128xf32>
    %4 = vector.broadcast %3 : vector<1x128xf32> to vector<128x128xf32>
    %5 = arith.addf %2, %4 : vector<128x128xf32>
    %cst_5 = arith.constant 0.000000e+00 : f32
    %6 = vector.broadcast %cst_5 : f32 to vector<128x128xf32>
    %7 = arith.maximumf %5, %6 : vector<128x128xf32>
    %8 = arith.truncf %7 : vector<128x128xf32> to vector<128x128xbf16>
    %c0_6 = arith.constant 0 : index
    %c0_7 = arith.constant 0 : index
    %9 = vector.load %arg4[%c0_6, %c0_7] : memref<128x128xbf16, #tpu.memory_space<vmem>>, vector<128x128xbf16>
    %cst_8 = arith.constant dense<0.000000e+00> : vector<128x128xf32>
    %10 = tpu.matmul %8, %9, %cst_8 {dimension_numbers = #tpu.dot_dimension_numbers<[1], [0], [0], [1], [0, 0, 1, 1], [], []>} : vector<128x128xbf16>, vector<128x128xbf16>, vector<128x128xf32> -> vector<128x128xf32>
    %c0_9 = arith.constant 0 : index
    %c0_10 = arith.constant 0 : index
    %11 = vector.load %arg5[%c0_9, %c0_10] : memref<1x128xf32, #tpu.memory_space<vmem>>, vector<1x128xf32>
    %12 = vector.broadcast %11 : vector<1x128xf32> to vector<128x128xf32>
    %13 = arith.addf %10, %12 : vector<128x128xf32>
    %c0_11 = arith.constant 0 : index
    %c0_12 = arith.constant 0 : index
    %14 = vector.load %arg6[%c0_11, %c0_12] : memref<128x128xf32, #tpu.memory_space<vmem>>, vector<128x128xf32>
    tpu.vector_store %arg6[%c0_11, %c0_12], %13 {strides = array<i32>} : memref<128x128xf32, #tpu.memory_space<vmem>>, vector<128x128xf32>,
    return
  }
  func.func @transform_0(%arg0: i32) -> (i32, i32) {
    %c0_i32 = arith.constant 0 : i32
    %c0_i32_0 = arith.constant 0 : i32
    return %arg0, %c0_i32 : i32, i32
  }
  func.func @transform_1(%arg0: i32) -> (i32, i32) {
    %c0_i32 = arith.constant 0 : i32
    %c0_i32_0 = arith.constant 0 : i32
    %c0_i32_1 = arith.constant 0 : i32
    return %c0_i32, %c0_i32_0 : i32, i32
  }
  func.func @transform_2(%arg0: i32) -> (i32, i32) {
    %c0_i32 = arith.constant 0 : i32
    %c0_i32_0 = arith.constant 0 : i32
    %c0_i32_1 = arith.constant 0 : i32
    return %c0_i32, %c0_i32_0 : i32, i32
  }
  func.func @transform_3(%arg0: i32) -> (i32, i32) {
    %c0_i32 = arith.constant 0 : i32
    %c0_i32_0 = arith.constant 0 : i32
    %c0_i32_1 = arith.constant 0 : i32
    return %c0_i32, %c0_i32_0 : i32, i32
  }
  func.func @transform_4(%arg0: i32) -> (i32, i32) {
    %c0_i32 = arith.constant 0 : i32
    %c0_i32_0 = arith.constant 0 : i32
    %c0_i32_1 = arith.constant 0 : i32
    return %c0_i32, %c0_i32_0 : i32, i32
  }
  func.func @transform_5(%arg0: i32) -> (i32, i32) {
    %c0_i32 = arith.constant 0 : i32
    %c0_i32_0 = arith.constant 0 : i32
    return %arg0, %c0_i32 : i32, i32
  }
}

</mosaic_0001>

<bundles_post_ra>
// kernel: forward.1
= control target key start
LH: loop header
LB: loop body
LE: loop exit
PB: predicated region body
PF: predicated region fallthrough
CT: control target
= control target key end

     0   :  { %s928_s18 = smov 0   ;;  %s1031_s0 = inlined_call_operand.vmem [shape: bf16[256,128], index: 0, kind: input, shape index: {}]   ;;  %s1032_s1 = inlined_call_operand.vmem [shape: bf16[128,128], index: 1, kind: input, shape index: {}]   ;;  %s1033_s2 = inlined_call_operand.vmem [shape: f32[1,128], index: 2, kind: input, shape index: {}]   ;;  %s1034_s3 = inlined_call_operand.vmem [shape: bf16[128,128], index: 3, kind: input, shape index: {}]   ;;  %s1035_s4 = inlined_call_operand.vmem [shape: f32[1,128], index: 4, kind: input, shape index: {}]   ;;  %s1036_s5 = inlined_call_operand.vmem [shape: f32[256,128], index: 5, kind: output, shape index: {}]  }
   0x1 LB: > { %s725_s19 = sadd.s32 4294967295, %s896_s18   ;;  %p729_p0 = scmp.ge.s32.totalorder %s896_s18, 1  ;;  %s896_s18 = sphi %s928_s18, %s15_s18  }
   0x2   : > { %p188_p1 = scmp.lt.s32.totalorder %s896_s18, 3 }
   0x4   : > { %p189_p2 = pnand %p729_p0, %p188_p1 }
   0x5   : > { %v866_v0 = vld [vmem:[%s1032_s1] sm:$0xff] (!%p189_p2)   ;;  %s730_s22 = sshll.u32 (!%p189_p2), %s725_s19, 4  ;;  %v867_v1 = vld [vmem:[%s1032_s1 + $0x8] sm:$0xff] (!%p189_p2)   ;;  %v868_v2 = vld [vmem:[%s1032_s1 + $0x10] sm:$0xff] (!%p189_p2)  }
   0x6   : > { %192 = sbr.rel (%p189_p2) target bundleno = 502 (0x1f6), region = 40  ;;  %p217_p3 = scmp.lt.s32.totalorder (!%p189_p2), %s730_s22, 31  ;;  %794 = vmatprep.subr.bf16.mxu0 (!%p189_p2), %v866_v0  ;;  %v869_v3 = vld [vmem:[%s1032_s1 + $0x18] sm:$0xff] (!%p189_p2)   ;;  %v870_v5 = vld [vmem:[%s1032_s1 + $0x20] sm:$0xff] (!%p189_p2)   ;;  %v871_v6 = vld [vmem:[%s1032_s1 + $0x28] sm:$0xff] (!%p189_p2)  }
   0x7   : > { %795 = vmatpush3.bf16.msra.mxu0 (!%p189_p2), %v866_v0  ;;  %v882_v7 = vld [vmem:[%s1034_s3] sm:$0xff] (!%p189_p2)   ;;  %v883_v8 = vld [vmem:[%s1034_s3 + $0x8] sm:$0xff] (!%p189_p2)   ;;  %v872_v9 = vld [vmem:[%s1032_s1 + $0x30] sm:$0xff] (!%p189_p2)  }
   0x8   : > { %796 = vmatprep.subr.bf16.mxu0 (!%p189_p2), %v867_v1  ;;  %826 = vmatprep.subr.bf16.mxu1 (!%p189_p2), %v882_v7  ;;  %v884_v10 = vld [vmem:[%s1034_s3 + $0x10] sm:$0xff] (!%p189_p2)   ;;  %v873_v11 = vld [vmem:[%s1032_s1 + $0x38] sm:$0xff] (!%p189_p2)   ;;  %v886_v13 = vld [vmem:[%s1034_s3 + $0x20] sm:$0xff] (!%p189_p2)  }
   0x9   : > { %827 = vmatpush3.bf16.msra.mxu1 (!%p189_p2), %v882_v7  ;;  %v885_v12 = vld [vmem:[%s1034_s3 + $0x18] sm:$0xff] (!%p189_p2)   ;;  %v887_v16 = vld [vmem:[%s1034_s3 + $0x28] sm:$0xff] (!%p189_p2)   ;;  %v888_v22 = vld [vmem:[%s1034_s3 + $0x30] sm:$0xff] (!%p189_p2)  }
   0xa   : > { %828 = vmatprep.subr.bf16.mxu1 (!%p189_p2), %v883_v8  ;;  %v889_v23 = vld [vmem:[%s1034_s3 + $0x38] sm:$0xff] (!%p189_p2)   ;;  %v734_v24 = vld [vmem:[%s1033_s2] ss:$0 sm:$0xff] (!%p189_p2) }
   0xb   : > { %797 = vmatpush3.bf16.msra.mxu0 (!%p189_p2), %v867_v1 }
   0xc   : > { %798 = vmatprep.subr.bf16.mxu0 (!%p189_p2), %v868_v2 }
   0xd   : > { %s1038_s22 = smov (!%p217_p3, %s730_s22), 31  ;;  %829 = vmatpush3.bf16.msra.mxu1 %v883_v8 }
   0xe   : > { %s731_s27 = sshll.u32 %s1038_s22, 2  ;;  %830 = vmatprep.subr.bf16.mxu1 %v884_v10 }
   0xf   : > { %s951_s30 = scalar_lea.vmem %s1031_s0, %s731_s27  ;;  %799 = vmatpush3.bf16.msra.mxu0 %v868_v2 }
  0x10   : > { %v874_v4 = vld [vmem:[%s951_s30] sm:$0xff]   ;;  %800 = vmatprep.subr.bf16.mxu0 %v869_v3  ;;  %v875_v14 = vld [vmem:[%s951_s30 + $0x8] sm:$0xff]   ;;  %v876_v15 = vld [vmem:[%s951_s30 + $0x10] sm:$0xff]  }
  0x11   : > { %810 = vmatprep.mubr.bf16.mxu0 %v874_v4  ;;  %831 = vmatpush3.bf16.msra.mxu1 %v884_v10  ;;  %v877_v17 = vld [vmem:[%s951_s30 + $0x18] sm:$0xff]   ;;  %v878_v18 = vld [vmem:[%s951_s30 + $0x20] sm:$0xff]   ;;  %v879_v19 = vld [vmem:[%s951_s30 + $0x28] sm:$0xff]  }
  0x12   : > { %832 = vmatprep.subr.bf16.mxu1 %v885_v12  ;;  %v880_v20 = vld [vmem:[%s951_s30 + $0x30] sm:$0xff]   ;;  %v881_v21 = vld [vmem:[%s951_s30 + $0x38] sm:$0xff]   ;;  %s733_s30 = sshll.u32 %s1038_s22, 3 }
  0x13   : > { %801 = vmatpush3.bf16.msra.mxu0 %v869_v3  ;;  %s1010_s16 = scalar_lea.vmem %s1036_s5, %s733_s30 }
  0x14   : > { %802 = vmatprep.subr.bf16.mxu0 %v870_v5 }
  0x15   : > { %833 = vmatpush3.bf16.msra.mxu1 %v885_v12 }
  0x16   : > { %834 = vmatprep.subr.bf16.mxu1 %v886_v13 }
  0x17   : > { %803 = vmatpush3.bf16.msra.mxu0 %v870_v5 }
  0x18   : > { %804 = vmatprep.subr.bf16.mxu0 %v871_v6 }
  0x19   : > { %835 = vmatpush3.bf16.msra.mxu1 %v886_v13 }
  0x1a   : > { %836 = vmatprep.subr.bf16.mxu1 %v887_v16 }
  0x1b   : > { %805 = vmatpush3.bf16.msra.mxu0 %v871_v6 }
  0x1c   : > { %806 = vmatprep.subr.bf16.mxu0 %v872_v9 }
  0x1d   : > { %837 = vmatpush3.bf16.msra.mxu1 %v887_v16 }
  0x1e   : > { %838 = vmatprep.subr.bf16.mxu1 %v888_v22 }
  0x1f   : > { %807 = vmatpush3.bf16.msra.mxu0 %v872_v9 }
  0x20   : > { %808 = vmatprep.subr.bf16.mxu0 %v873_v11 }
  0x21   : > { %839 = vmatpush3.bf16.msra.mxu1 %v888_v22 }
  0x22   : > { %840 = vmatprep.subr.bf16.mxu1 %v889_v23 }
  0x23   : > { %809 = vmatpush3.bf16.msra.mxu0 %v873_v11 }
  0x25   : > { %841 = vmatpush3.bf16.msra.mxu1 %v889_v23 }
  0x26   : > { %811 = vmatmul.mubr.bf16.vlgmr.msra.gmra.mrb[0].mxu0 %v875_v14 }
  0x27   : > { %814 = vmatprep.mubr.bf16.mxu0 %v876_v15 }
  0x2e   : > { %815 = vmatmul.mubr.bf16.gmra.mrb[4].mxu0 %v877_v17  ;;  %v751_v17 = vld [vmem:[%s1035_s4] ss:$0 sm:$0xff] }
  0x2f   : > { %818 = vmatprep.mubr.bf16.mxu0 %v878_v18 }
  0x36   : > { %819 = vmatmul.mubr.bf16.gmra.mrb[8].mxu0 %v879_v19 }
  0x37   : > { %822 = vmatprep.mubr.bf16.mxu0 %v880_v20 }
  0x3e   : > { %823 = vmatmul.mubr.bf16.gmra.mrb[12].mxu0 %v881_v21 }
  0xf9   : > { %v812_v25 = vpop.f32.mrb[0].mxu0 }
  0xfa   : > { %v407_v26 = vadd.f32 %v812_v25, %v734_v24  ;;  %v398_v27 = vpop.f32.mrb[1].mxu0 }
  0xfb   : > { %v399_v28 = vadd.f32 %v734_v24, %v398_v27  ;;  %v813_v29 = vpop.f32.mrb[2].mxu0 }
  0xfc   : > { %v410_v30 = vadd.f32 %v813_v29, %v734_v24  ;;  %v401_v31 = vpop.f32.mrb[3].mxu0  ;;  %v463_v33 = vmax.f32 %v407_v26, 0.0 }
  0xfd   : > { %v402_v32 = vadd.f32 %v734_v24, %v401_v31  ;;  %v461_v35 = vmax.f32 %v399_v28, 0.0 }
  0xfe   : > { %v464_v34 = vmax.f32 %v410_v30, 0.0 }
  0xff   : > { %v462_v36 = vmax.f32 %v402_v32, 0.0 }
 0x100   : > { %v478_v37 = vpack.c.bf16 %v464_v34, %v463_v33 }
 0x101   : > { %v816_v38 = vpop.f32.mrb[4].mxu0  ;;  %v477_v39 = vpack.c.bf16 %v462_v36, %v461_v35 }
 0x102   : > { %v423_v40 = vadd.f32 %v816_v38, %v734_v24  ;;  %v414_v41 = vpop.f32.mrb[5].mxu0 }
 0x103   : > { %v415_v42 = vadd.f32 %v734_v24, %v414_v41  ;;  %v817_v43 = vpop.f32.mrb[6].mxu0  ;;  %842 = vmatprep.mubr.bf16.mxu1 %v477_v39 }
 0x104   : > { %v426_v44 = vadd.f32 %v817_v43, %v734_v24  ;;  %v417_v45 = vpop.f32.mrb[7].mxu0  ;;  %843 = vmatmul.mubr.bf16.vlgmr.msra.gmra.mrb[0].mxu1 %v478_v37  ;;  %v467_v47 = vmax.f32 %v423_v40, 0.0 }
 0x105   : > { %v418_v46 = vadd.f32 %v734_v24, %v417_v45  ;;  %v465_v49 = vmax.f32 %v415_v42, 0.0 }
 0x106   : > { %v468_v48 = vmax.f32 %v426_v44, 0.0 }
 0x107   : > { %v466_v50 = vmax.f32 %v418_v46, 0.0 }
 0x108   : > { %v480_v51 = vpack.c.bf16 %v468_v48, %v467_v47 }
 0x109   : > { %v479_v52 = vpack.c.bf16 %v466_v50, %v465_v49  ;;  %v820_v53 = vpop.f32.mrb[8].mxu0 }
 0x10a   : > { %v439_v54 = vadd.f32 %v820_v53, %v734_v24  ;;  %v430_v55 = vpop.f32.mrb[9].mxu0 }
 0x10b   : > { %v431_v56 = vadd.f32 %v734_v24, %v430_v55  ;;  %v821_v57 = vpop.f32.mrb[10].mxu0  ;;  %846 = vmatprep.mubr.bf16.mxu1 %v479_v52 }
 0x10c   : > { %v442_v58 = vadd.f32 %v821_v57, %v734_v24  ;;  %v433_v59 = vpop.f32.mrb[11].mxu0  ;;  %847 = vmatmul.mubr.bf16.gmra.mrb[4].mxu1 %v480_v51  ;;  %v471_v61 = vmax.f32 %v439_v54, 0.0 }
 0x10d   : > { %v434_v60 = vadd.f32 %v734_v24, %v433_v59  ;;  %v469_v63 = vmax.f32 %v431_v56, 0.0 }
 0x10e   : > { %v472_v62 = vmax.f32 %v442_v58, 0.0 }
 0x10f   : > { %v470_v0 = vmax.f32 %v434_v60, 0.0 }
 0x110   : > { %v482_v1 = vpack.c.bf16 %v472_v62, %v471_v61 }
 0x111   : > { %v481_v2 = vpack.c.bf16 %v470_v0, %v469_v63  ;;  %v824_v3 = vpop.f32.mrb[12].mxu0 }
 0x112   : > { %v455_v4 = vadd.f32 %v824_v3, %v734_v24  ;;  %v446_v5 = vpop.f32.mrb[13].mxu0 }
 0x113   : > { %v447_v6 = vadd.f32 %v734_v24, %v446_v5  ;;  %v825_v7 = vpop.f32.mrb[14].mxu0  ;;  %850 = vmatprep.mubr.bf16.mxu1 %v481_v2 }
 0x114   : > { %v458_v8 = vadd.f32 %v825_v7, %v734_v24  ;;  %v449_v9 = vpop.f32.mrb[15].mxu0  ;;  %851 = vmatmul.mubr.bf16.gmra.mrb[8].mxu1 %v482_v1  ;;  %v475_v11 = vmax.f32 %v455_v4, 0.0 }
 0x115   : > { %v450_v10 = vadd.f32 %v734_v24, %v449_v9  ;;  %v473_v13 = vmax.f32 %v447_v6, 0.0 }
 0x116   : > { %v476_v12 = vmax.f32 %v458_v8, 0.0 }
 0x117   : > { %v474_v14 = vmax.f32 %v450_v10, 0.0 }
 0x118   : > { %v484_v15 = vpack.c.bf16 %v476_v12, %v475_v11 }
 0x119   : > { %v483_v16 = vpack.c.bf16 %v474_v14, %v473_v13 }
 0x11b   : > { %854 = vmatprep.mubr.bf16.mxu1 %v483_v16 }
 0x11c   : > { %855 = vmatmul.mubr.bf16.gmra.mrb[12].mxu1 %v484_v15 }
 0x1d7   : > { %v844_v18 = vpop.f32.mrb[0].mxu1 }
 0x1d8   : > { %v599_v19 = vadd.f32 %v844_v18, %v751_v17  ;;  %v590_v20 = vpop.f32.mrb[1].mxu1 }
 0x1d9   : > { %v591_v21 = vadd.f32 %v751_v17, %v590_v20  ;;  %v845_v22 = vpop.f32.mrb[2].mxu1 }
 0x1da   : > { %655 = vst [vmem:[%s1010_s16 + $0x10] sm:$0xff] %v599_v19  ;;  %v602_v23 = vadd.f32 %v845_v22, %v751_v17  ;;  %v593_v24 = vpop.f32.mrb[3].mxu1 }
 0x1db   : > { %653 = vst [vmem:[%s1010_s16] sm:$0xff] %v591_v21  ;;  %v594_v25 = vadd.f32 %v751_v17, %v593_v24 }
 0x1dc   : > { %656 = vst [vmem:[%s1010_s16 + $0x18] sm:$0xff] %v602_v23 }
 0x1dd   : > { %654 = vst [vmem:[%s1010_s16 + $0x8] sm:$0xff] %v594_v25 }
 0x1df   : > { %v848_v26 = vpop.f32.mrb[4].mxu1 }
 0x1e0   : > { %v615_v27 = vadd.f32 %v848_v26, %v751_v17  ;;  %v606_v28 = vpop.f32.mrb[5].mxu1 }
 0x1e1   : > { %v607_v29 = vadd.f32 %v751_v17, %v606_v28  ;;  %v849_v30 = vpop.f32.mrb[6].mxu1 }
 0x1e2   : > { %659 = vst [vmem:[%s1010_s16 + $0x30] sm:$0xff] %v615_v27  ;;  %v618_v31 = vadd.f32 %v849_v30, %v751_v17  ;;  %v609_v32 = vpop.f32.mrb[7].mxu1 }
 0x1e3   : > { %657 = vst [vmem:[%s1010_s16 + $0x20] sm:$0xff] %v607_v29  ;;  %v610_v33 = vadd.f32 %v751_v17, %v609_v32 }
 0x1e4   : > { %660 = vst [vmem:[%s1010_s16 + $0x38] sm:$0xff] %v618_v31 }
 0x1e5   : > { %658 = vst [vmem:[%s1010_s16 + $0x28] sm:$0xff] %v610_v33 }
 0x1e7   : > { %v852_v34 = vpop.f32.mrb[8].mxu1 }
 0x1e8   : > { %v631_v35 = vadd.f32 %v852_v34, %v751_v17  ;;  %v622_v36 = vpop.f32.mrb[9].mxu1 }
 0x1e9   : > { %v623_v37 = vadd.f32 %v751_v17, %v622_v36  ;;  %v853_v38 = vpop.f32.mrb[10].mxu1 }
 0x1ea   : > { %663 = vst [vmem:[%s1010_s16 + $0x50] sm:$0xff] %v631_v35  ;;  %v634_v39 = vadd.f32 %v853_v38, %v751_v17  ;;  %v625_v40 = vpop.f32.mrb[11].mxu1 }
 0x1eb   : > { %661 = vst [vmem:[%s1010_s16 + $0x40] sm:$0xff] %v623_v37  ;;  %v626_v41 = vadd.f32 %v751_v17, %v625_v40 }
 0x1ec   : > { %664 = vst [vmem:[%s1010_s16 + $0x58] sm:$0xff] %v634_v39 }
 0x1ed   : > { %662 = vst [vmem:[%s1010_s16 + $0x48] sm:$0xff] %v626_v41 }
 0x1ef   : > { %v856_v42 = vpop.f32.mrb[12].mxu1 }
 0x1f0   : > { %v647_v43 = vadd.f32 %v856_v42, %v751_v17  ;;  %v638_v44 = vpop.f32.mrb[13].mxu1 }
 0x1f1   : > { %v639_v45 = vadd.f32 %v751_v17, %v638_v44  ;;  %v857_v46 = vpop.f32.mrb[14].mxu1 }
 0x1f2   : > { %667 = vst [vmem:[%s1010_s16 + $0x70] sm:$0xff] %v647_v43  ;;  %v650_v47 = vadd.f32 %v857_v46, %v751_v17  ;;  %v641_v48 = vpop.f32.mrb[15].mxu1 }
 0x1f3   : > { %665 = vst [vmem:[%s1010_s16 + $0x60] sm:$0xff] %v639_v45  ;;  %v642_v49 = vadd.f32 %v751_v17, %v641_v48 }
 0x1f4   : > { %668 = vst [vmem:[%s1010_s16 + $0x78] sm:$0xff] %v650_v47 }
 0x1f5   : > { %666 = vst [vmem:[%s1010_s16 + $0x68] sm:$0xff] %v642_v49 }
 0x1f6 PF: > { %s15_s18 = sadd.s32 1, %s896_s18  }
 0x1f7   : > { %p12_p4 = scmp.ge.s32.totalorder %s15_s18, 4  }
 0x1f9   :  { %14 = sbr.rel (!%p12_p4) target bundleno = 1 (0x1), region = 70 }

</bundles_post_ra>
